<compile_context>
chip_gen: v5e
topology: v5e:2x2
jax: 0.10.0
libtpu: 0.0.40
codegen_flags: <defaults>
</compile_context>

<pallas_src>
import functools
import math

import numpy as np
import jax
import jax.numpy as jnp
from jax.experimental import pallas as pl
from jax.experimental.pallas import tpu as pltpu


def _round_up(x, m):
    return (x + m - 1) // m * m


def film_kernel(a_ref, b_ref, w1_ref, b1_ref, w2_ref, b2_ref, o_ref, *, K, Kp):
    # a_ref : (R, D)    R = G*Kp rows = G whole (time-padded) batch elements
    # b_ref : (R, C)    FiLM conditioning
    # w1_ref: (3*D, C)  conv1 taps stacked along the contraction dim (bf16)
    # b1_ref: (1, C)    f32
    # w2_ref: (3*C, D)  conv2 taps stacked (bf16)
    # b2_ref: (1, D)    f32
    # o_ref : (R, D)
    R = a_ref.shape[0]
    row = jax.lax.broadcasted_iota(jnp.int32, (R, 1), 0)
    k_idx = row % Kp if Kp < R else row          # time index within each batch
    edge_mask = (K == Kp)     # batches packed back-to-back -> mask cross-batch rows
    # When Kp > K each batch carries >=1 trailing zero row, so the shifted
    # copies never leak across batches; only the padded h rows must be zeroed.

    def taps(x):
        # row r of x_m1/x_p1 holds x[r-1] / x[r+1]; conv zero padding at the
        # per-batch boundaries is enforced by masking (or by the padded rows).
        x_m1 = pltpu.roll(x, shift=1, axis=0)
        x_p1 = pltpu.roll(x, shift=R - 1, axis=0)
        if edge_mask:
            x_m1 = jnp.where(k_idx == 0, 0.0, x_m1)
            x_p1 = jnp.where(k_idx == Kp - 1, 0.0, x_p1)
        # Lane-concatenate the three taps -> one deep contraction on the MXU.
        return jnp.concatenate([x_m1, x, x_p1], axis=-1)

    # ---- conv1: one (R, 3D) @ (3D, C) matmul, f32 accumulation --------------
    lhs1 = taps(a_ref[...]).astype(w1_ref.dtype)
    h = jnp.dot(lhs1, w1_ref[...], preferred_element_type=jnp.float32) + b1_ref[...]

    # ---- LeakyReLU(0.1) + FiLM conditioning add (all f32) -------------------
    h = jnp.maximum(h, 0.1 * h) + b_ref[...].astype(jnp.float32)
    if K != Kp:
        h = jnp.where(k_idx >= K, 0.0, h)        # padded rows are conv2's zeros

    # ---- conv2: one (R, 3C) @ (3C, D) matmul ---------------------------------
    lhs2 = taps(h).astype(w2_ref.dtype)
    y = jnp.dot(lhs2, w2_ref[...], preferred_element_type=jnp.float32) + b2_ref[...]
    o_ref[...] = y.astype(o_ref.dtype)


def prepare_film_params(w1, b1, w2, b2, *, compute_dtype=jnp.bfloat16):
    """One-time weight prep.  Cache the returned dict and reuse it across calls;
    the transpose / tap-stack / cast passes must not run on every forward."""
    C, D, kw = w1.shape
    assert kw == 3 and w2.shape == (D, C, 3) and b1.shape == (C,) and b2.shape == (D,)
    # torch Conv1d weight (out, in, 3) -> per-tap (in, out), taps stacked along
    # the contraction dim so each conv is a single deep matmul.
    w1s = jnp.transpose(w1, (2, 1, 0)).reshape(3 * D, C).astype(compute_dtype)
    w2s = jnp.transpose(w2, (2, 1, 0)).reshape(3 * C, D).astype(compute_dtype)
    return {
        "w1": w1s, "b1": b1.astype(jnp.float32).reshape(1, C),
        "w2": w2s, "b2": b2.astype(jnp.float32).reshape(1, D),
    }


def film_layer(a, b, params, *, target_rows=512):
    """FiLMLayer forward.  a: (B,K,D) f32, b: (B,K,C) f32 -> (B,K,D) f32."""
    B, K, D = a.shape
    C = b.shape[2]
    assert b.shape == (B, K, C)
    assert params["w1"].shape == (3 * D, C) and params["w2"].shape == (3 * C, D)

    # ---- fold (batch, time) into the matmul-M dimension ---------------------
    Kp = _round_up(K, 8)                          # sublane-aligned rows per batch
    G = min(B, max(1, target_rows // Kp))         # batch elements per grid step
    steps = pl.cdiv(B, G)
    if steps == 1 and B > 1 and ((B + 1) // 2) * Kp >= 128:
        G = (B + 1) // 2                          # keep both v7x TCs busy if worth it
        steps = pl.cdiv(B, G)
    Bp = steps * G
    R = G * Kp                                    # matmul rows per grid step

    # Inputs stay in their original dtype (cast to bf16 inside the kernel).
    # If no padding is required the reshape is metadata-only (no HBM pass).
    if (Bp, Kp) == (B, K):
        a_in = a.reshape(B * K, D)
        b_in = b.reshape(B * K, C)
    else:
        a_in = jnp.zeros((Bp, Kp, D), a.dtype).at[:B, :K].set(a).reshape(Bp * Kp, D)
        b_in = jnp.zeros((Bp, Kp, C), b.dtype).at[:B, :K].set(b).reshape(Bp * Kp, C)

    # ---- cost / VMEM bookkeeping (right-sized from actual block bytes) ------
    blk_bytes = R * (D * a_in.dtype.itemsize + C * b_in.dtype.itemsize
                     + D * a.dtype.itemsize)
    w_bytes = sum(int(v.size) * v.dtype.itemsize for v in params.values())
    vmem_limit = int(min(4 * blk_bytes + 2 * w_bytes + (8 << 20), 64 << 20))
    flops = 2 * Bp * Kp * (3 * D * C + 3 * C * D)
    bytes_accessed = steps * blk_bytes + w_bytes

    kernel = functools.partial(film_kernel, K=K, Kp=Kp)

    out_flat = pl.pallas_call(
        kernel,
        out_shape=jax.ShapeDtypeStruct((Bp * Kp, D), a.dtype),
        grid_spec=pltpu.PrefetchScalarGridSpec(
            num_scalar_prefetch=0,
            grid=(steps,),
            in_specs=[
                pl.BlockSpec((R, D), lambda t: (t, 0)),        # a rows (per step)
                pl.BlockSpec((R, C), lambda t: (t, 0)),        # b rows (per step)
                pl.BlockSpec((3 * D, C), lambda t: (0, 0)),    # conv1 weights (resident)
                pl.BlockSpec((1, C), lambda t: (0, 0)),        # conv1 bias
                pl.BlockSpec((3 * C, D), lambda t: (0, 0)),    # conv2 weights (resident)
                pl.BlockSpec((1, D), lambda t: (0, 0)),        # conv2 bias
            ],
            out_specs=pl.BlockSpec((R, D), lambda t: (t, 0)),
        ),
        compiler_params=pltpu.CompilerParams(
            dimension_semantics=("parallel",),
            vmem_limit_bytes=vmem_limit,
        ),
        cost_estimate=pl.CostEstimate(
            flops=int(flops), transcendentals=0,
            bytes_accessed=int(bytes_accessed)),
    )(a_in, b_in, params["w1"], params["b1"], params["w2"], params["b2"])

    out = out_flat.reshape(Bp, Kp, D)
    if (Bp, Kp) != (B, K):
        out = out[:B, :K]                          # only needed when padding was added
    return out


def film_reference(a, b, w1, b1, w2, b2, *, compute_dtype=jnp.bfloat16):
    """Pure-JAX reference (lax.conv) mirroring the kernel's bf16-operand /
    f32-accumulate numerics (FiLM add and biases in f32)."""
    f32 = jnp.float32
    rd = lambda t: t.astype(compute_dtype).astype(f32)        # bf16 rounding
    x = jnp.transpose(rd(a), (0, 2, 1))                       # (B, D, K)
    h = jax.lax.conv_general_dilated(
        x, rd(w1), window_strides=(1,), padding=((1, 1),),
        dimension_numbers=("NCH", "OIH", "NCH"),
        precision=jax.lax.Precision.HIGHEST) + b1.astype(f32)[None, :, None]
    h = jnp.maximum(h, 0.1 * h)
    h = jnp.transpose(h, (0, 2, 1)) + b.astype(f32)           # FiLM add in f32
    h = jnp.transpose(rd(h), (0, 2, 1))                       # conv2 sees bf16-rounded h
    y = jax.lax.conv_general_dilated(
        h, rd(w2), window_strides=(1,), padding=((1, 1),),
        dimension_numbers=("NCH", "OIH", "NCH"),
        precision=jax.lax.Precision.HIGHEST) + b2.astype(f32)[None, :, None]
    return jnp.transpose(y, (0, 2, 1))                        # (B, K, D)


def init_params(key, input_channels, intermediate_channels):
    """torch.nn.Conv1d default init: uniform(+-1/sqrt(in_channels*kernel_size))."""
    k1, k2, k3, k4 = jax.random.split(key, 4)
    bound1 = 1.0 / math.sqrt(input_channels * 3)
    bound2 = 1.0 / math.sqrt(intermediate_channels * 3)
    w1 = jax.random.uniform(k1, (intermediate_channels, input_channels, 3),
                            jnp.float32, -bound1, bound1)
    b1 = jax.random.uniform(k2, (intermediate_channels,), jnp.float32, -bound1, bound1)
    w2 = jax.random.uniform(k3, (input_channels, intermediate_channels, 3),
                            jnp.float32, -bound2, bound2)
    b2 = jax.random.uniform(k4, (input_channels,), jnp.float32, -bound2, bound2)
    return w1, b1, w2, b2


if __name__ == "__main__":
    key = jax.random.PRNGKey(0)
    ka, kb, kp = jax.random.split(key, 3)

    batch, K, input_channels, intermediate_channels = 2, 24, 32, 64
    a = jax.random.normal(ka, (batch, K, input_channels), jnp.float32)
    b = jax.random.normal(kb, (batch, K, intermediate_channels), jnp.float32)
    w1, b1, w2, b2 = init_params(kp, input_channels, intermediate_channels)

    # One-time weight prep (cache this across forward calls).
    params = prepare_film_params(w1, b1, w2, b2)
    params = jax.tree_util.tree_map(jax.block_until_ready, params)

    film = jax.jit(film_layer)
    out = jax.block_until_ready(film(a, b, params))

    ref = film_reference(a, b, w1, b1, w2, b2)
    assert out.shape == (batch, K, input_channels)
    max_err = float(jnp.max(jnp.abs(out - ref)))
    assert jnp.allclose(out, ref, atol=2e-2, rtol=2e-2), max_err

    print("KERNEL_OK")
</pallas_src>

<mosaic_0001>
module attributes {stable_mosaic.version = 11 : i64} {
  func.func @film_kernel(%arg0: i32, %arg1: memref<48x32xf32, #tpu.memory_space<vmem>>, %arg2: memref<48x64xf32, #tpu.memory_space<vmem>>, %arg3: memref<96x64xbf16, #tpu.memory_space<vmem>>, %arg4: memref<1x64xf32, #tpu.memory_space<vmem>>, %arg5: memref<192x32xbf16, #tpu.memory_space<vmem>>, %arg6: memref<1x32xf32, #tpu.memory_space<vmem>>, %arg7: memref<48x32xf32, #tpu.memory_space<vmem>>) attributes {dimension_semantics = [#tpu.dimension_semantics<parallel>], iteration_bounds = array<i64: 1>, scalar_prefetch = 0 : i64, scratch_operands = 0 : i64, tpu.core_type = #tpu.core_type<tc>, window_params = [{transform_indices = @transform_0, window_bounds = array<i64: 48, 32>}, {transform_indices = @transform_1, window_bounds = array<i64: 48, 64>}, {pipeline_mode = #tpu.pipeline_mode<synchronous>, transform_indices = @transform_2, window_bounds = array<i64: 96, 64>}, {pipeline_mode = #tpu.pipeline_mode<synchronous>, transform_indices = @transform_3, window_bounds = array<i64: 1, 64>}, {pipeline_mode = #tpu.pipeline_mode<synchronous>, transform_indices = @transform_4, window_bounds = array<i64: 192, 32>}, {pipeline_mode = #tpu.pipeline_mode<synchronous>, transform_indices = @transform_5, window_bounds = array<i64: 1, 32>}, {transform_indices = @transform_6, window_bounds = array<i64: 48, 32>}]} {
    %0 = tpu.iota {dimensions = array<i32: 0>} : vector<48x1xi32>
    %c24_i32 = arith.constant 24 : i32
    %c0_i32 = arith.constant 0 : i32
    %1 = arith.cmpi eq, %c24_i32, %c0_i32 : i32
    %c1_i32 = arith.constant 1 : i32
    %2 = arith.select %1, %c1_i32, %c24_i32 : i32
    %3 = vector.broadcast %2 : i32 to vector<48x1xi32>
    %4 = arith.remsi %0, %3 : vector<48x1xi32>
    %c0_i32_0 = arith.constant 0 : i32
    %5 = vector.broadcast %c0_i32_0 : i32 to vector<48x1xi32>
    %6 = arith.cmpi ne, %4, %5 : vector<48x1xi32>
    %c0_i32_1 = arith.constant 0 : i32
    %7 = vector.broadcast %c0_i32_1 : i32 to vector<48x1xi32>
    %8 = arith.cmpi slt, %4, %7 : vector<48x1xi32>
    %c0_i32_2 = arith.constant 0 : i32
    %9 = arith.cmpi slt, %2, %c0_i32_2 : i32
    %10 = vector.broadcast %9 : i1 to vector<48x1xi1>
    %11 = vector.broadcast %10 : vector<48x1xi1> to vector<48x1xi1>
    %12 = arith.xori %8, %11 : vector<48x1xi1>
    %13 = arith.andi %12, %6 : vector<48x1xi1>
    %14 = vector.broadcast %2 : i32 to vector<48x1xi32>
    %15 = arith.addi %4, %14 : vector<48x1xi32>
    %16 = arith.select %13, %15, %4 : vector<48x1xi1>, vector<48x1xi32>
    %c0 = arith.constant 0 : index
    %c0_3 = arith.constant 0 : index
    %17 = vector.load %arg1[%c0, %c0_3] : memref<48x32xf32, #tpu.memory_space<vmem>>, vector<48x32xf32>
    %c1_i32_4 = arith.constant 1 : i32
    %18 = tpu.dynamic_rotate %17 by %c1_i32_4 dim 0 : vector<48x32xf32>, i32 -> vector<48x32xf32>
    %c47_i32 = arith.constant 47 : i32
    %19 = tpu.dynamic_rotate %17 by %c47_i32 dim 0 : vector<48x32xf32>, i32 -> vector<48x32xf32>
    %c0_i32_5 = arith.constant 0 : i32
    %20 = vector.broadcast %c0_i32_5 : i32 to vector<48x1xi32>
    %21 = arith.cmpi eq, %16, %20 : vector<48x1xi32>
    %cst = arith.constant 0.000000e+00 : f32
    %22 = vector.shape_cast %21 : vector<48x1xi1> to vector<48x1xi1>
    %23 = vector.broadcast %22 : vector<48x1xi1> to vector<48x32xi1>
    %24 = vector.broadcast %cst : f32 to vector<48x32xf32>
    %25 = arith.select %23, %24, %18 : vector<48x32xi1>, vector<48x32xf32>
    %c23_i32 = arith.constant 23 : i32
    %26 = vector.broadcast %c23_i32 : i32 to vector<48x1xi32>
    %27 = arith.cmpi eq, %16, %26 : vector<48x1xi32>
    %cst_6 = arith.constant 0.000000e+00 : f32
    %28 = vector.shape_cast %27 : vector<48x1xi1> to vector<48x1xi1>
    %29 = vector.broadcast %28 : vector<48x1xi1> to vector<48x32xi1>
    %30 = vector.broadcast %cst_6 : f32 to vector<48x32xf32>
    %31 = arith.select %29, %30, %19 : vector<48x32xi1>, vector<48x32xf32>
    %32 = tpu.concatenate %25, %17, %31 in 1 : vector<48x32xf32>, vector<48x32xf32>, vector<48x32xf32> -> vector<48x96xf32>
    %33 = arith.truncf %32 : vector<48x96xf32> to vector<48x96xbf16>
    %c0_7 = arith.constant 0 : index
    %c0_8 = arith.constant 0 : index
    %34 = vector.load %arg3[%c0_7, %c0_8] : memref<96x64xbf16, #tpu.memory_space<vmem>>, vector<96x64xbf16>
    %cst_9 = arith.constant dense<0.000000e+00> : vector<48x64xf32>
    %35 = tpu.matmul %33, %34, %cst_9 {dimension_numbers = #tpu.dot_dimension_numbers<[1], [0], [0], [1], [0, 0, 1, 1], [], []>} : vector<48x96xbf16>, vector<96x64xbf16>, vector<48x64xf32> -> vector<48x64xf32>
    %c0_10 = arith.constant 0 : index
    %c0_11 = arith.constant 0 : index
    %36 = vector.load %arg4[%c0_10, %c0_11] : memref<1x64xf32, #tpu.memory_space<vmem>>, vector<1x64xf32>
    %37 = vector.broadcast %36 : vector<1x64xf32> to vector<48x64xf32>
    %38 = arith.addf %35, %37 : vector<48x64xf32>
    %cst_12 = arith.constant 1.000000e-01 : f32
    %39 = vector.broadcast %cst_12 : f32 to vector<48x64xf32>
    %40 = arith.mulf %39, %38 : vector<48x64xf32>
    %41 = arith.maximumf %38, %40 : vector<48x64xf32>
    %c0_13 = arith.constant 0 : index
    %c0_14 = arith.constant 0 : index
    %42 = vector.load %arg2[%c0_13, %c0_14] : memref<48x64xf32, #tpu.memory_space<vmem>>, vector<48x64xf32>
    %43 = arith.addf %41, %42 : vector<48x64xf32>
    %c1_i32_15 = arith.constant 1 : i32
    %44 = tpu.dynamic_rotate %43 by %c1_i32_15 dim 0 : vector<48x64xf32>, i32 -> vector<48x64xf32>
    %c47_i32_16 = arith.constant 47 : i32
    %45 = tpu.dynamic_rotate %43 by %c47_i32_16 dim 0 : vector<48x64xf32>, i32 -> vector<48x64xf32>
    %c0_i32_17 = arith.constant 0 : i32
    %46 = vector.broadcast %c0_i32_17 : i32 to vector<48x1xi32>
    %47 = arith.cmpi eq, %16, %46 : vector<48x1xi32>
    %cst_18 = arith.constant 0.000000e+00 : f32
    %48 = vector.shape_cast %47 : vector<48x1xi1> to vector<48x1xi1>
    %49 = vector.broadcast %48 : vector<48x1xi1> to vector<48x64xi1>
    %50 = vector.broadcast %cst_18 : f32 to vector<48x64xf32>
    %51 = arith.select %49, %50, %44 : vector<48x64xi1>, vector<48x64xf32>
    %c23_i32_19 = arith.constant 23 : i32
    %52 = vector.broadcast %c23_i32_19 : i32 to vector<48x1xi32>
    %53 = arith.cmpi eq, %16, %52 : vector<48x1xi32>
    %cst_20 = arith.constant 0.000000e+00 : f32
    %54 = vector.shape_cast %53 : vector<48x1xi1> to vector<48x1xi1>
    %55 = vector.broadcast %54 : vector<48x1xi1> to vector<48x64xi1>
    %56 = vector.broadcast %cst_20 : f32 to vector<48x64xf32>
    %57 = arith.select %55, %56, %45 : vector<48x64xi1>, vector<48x64xf32>
    %58 = tpu.concatenate %51, %43, %57 in 1 : vector<48x64xf32>, vector<48x64xf32>, vector<48x64xf32> -> vector<48x192xf32>
    %59 = arith.truncf %58 : vector<48x192xf32> to vector<48x192xbf16>
    %c0_21 = arith.constant 0 : index
    %c0_22 = arith.constant 0 : index
    %60 = vector.load %arg5[%c0_21, %c0_22] : memref<192x32xbf16, #tpu.memory_space<vmem>>, vector<192x32xbf16>
    %cst_23 = arith.constant dense<0.000000e+00> : vector<48x32xf32>
    %61 = tpu.matmul %59, %60, %cst_23 {dimension_numbers = #tpu.dot_dimension_numbers<[1], [0], [0], [1], [0, 0, 1, 1], [], []>} : vector<48x192xbf16>, vector<192x32xbf16>, vector<48x32xf32> -> vector<48x32xf32>
    %c0_24 = arith.constant 0 : index
    %c0_25 = arith.constant 0 : index
    %62 = vector.load %arg6[%c0_24, %c0_25] : memref<1x32xf32, #tpu.memory_space<vmem>>, vector<1x32xf32>
    %63 = vector.broadcast %62 : vector<1x32xf32> to vector<48x32xf32>
    %64 = arith.addf %61, %63 : vector<48x32xf32>
    %c0_26 = arith.constant 0 : index
    %c0_27 = arith.constant 0 : index
    %65 = vector.load %arg7[%c0_26, %c0_27] : memref<48x32xf32, #tpu.memory_space<vmem>>, vector<48x32xf32>
    tpu.vector_store %arg7[%c0_26, %c0_27], %64 {strides = array<i32>} : memref<48x32xf32, #tpu.memory_space<vmem>>, vector<48x32xf32>,
    return
  }
  func.func @transform_0(%arg0: i32) -> (i32, i32) {
    %c0_i32 = arith.constant 0 : i32
    %c0_i32_0 = arith.constant 0 : i32
    return %arg0, %c0_i32 : i32, i32
  }
  func.func @transform_1(%arg0: i32) -> (i32, i32) {
    %c0_i32 = arith.constant 0 : i32
    %c0_i32_0 = arith.constant 0 : i32
    return %arg0, %c0_i32 : i32, i32
  }
  func.func @transform_2(%arg0: i32) -> (i32, i32) {
    %c0_i32 = arith.constant 0 : i32
    %c0_i32_0 = arith.constant 0 : i32
    %c0_i32_1 = arith.constant 0 : i32
    return %c0_i32, %c0_i32_0 : i32, i32
  }
  func.func @transform_3(%arg0: i32) -> (i32, i32) {
    %c0_i32 = arith.constant 0 : i32
    %c0_i32_0 = arith.constant 0 : i32
    %c0_i32_1 = arith.constant 0 : i32
    return %c0_i32, %c0_i32_0 : i32, i32
  }
  func.func @transform_4(%arg0: i32) -> (i32, i32) {
    %c0_i32 = arith.constant 0 : i32
    %c0_i32_0 = arith.constant 0 : i32
    %c0_i32_1 = arith.constant 0 : i32
    return %c0_i32, %c0_i32_0 : i32, i32
  }
  func.func @transform_5(%arg0: i32) -> (i32, i32) {
    %c0_i32 = arith.constant 0 : i32
    %c0_i32_0 = arith.constant 0 : i32
    %c0_i32_1 = arith.constant 0 : i32
    return %c0_i32, %c0_i32_0 : i32, i32
  }
  func.func @transform_6(%arg0: i32) -> (i32, i32) {
    %c0_i32 = arith.constant 0 : i32
    %c0_i32_0 = arith.constant 0 : i32
    return %arg0, %c0_i32 : i32, i32
  }
}

</mosaic_0001>

<bundles_post_ra>
// kernel: film_layer.1
= control target key start
LH: loop header
LB: loop body
LE: loop exit
PB: predicated region body
PF: predicated region fallthrough
CT: control target
= control target key end

     0   :  { %v25_v2 = vlaneseq  ;;  %s927_s29 = smov 32   ;;  %s1362_s0 = inlined_call_operand.vmem [shape: f32[48,32], index: 0, kind: input, shape index: {}]   ;;  %s1363_s1 = inlined_call_operand.vmem [shape: f32[48,64], index: 1, kind: input, shape index: {}]   ;;  %s1364_s2 = inlined_call_operand.vmem [shape: bf16[96,64], index: 2, kind: input, shape index: {}]   ;;  %s1365_s3 = inlined_call_operand.vmem [shape: f32[1,64], index: 3, kind: input, shape index: {}]   ;;  %s1366_s4 = inlined_call_operand.vmem [shape: bf16[192,32], index: 4, kind: input, shape index: {}]   ;;  %s1367_s5 = inlined_call_operand.vmem [shape: f32[1,32], index: 5, kind: input, shape index: {}]   ;;  %s1368_s6 = inlined_call_operand.hbm [shape: f32[48,32], index: 6, kind: output, shape index: {}]  }
   0x1   :  { %v971_v0 = vld [vmem:[%s1362_s0] sm:$0xff]  ;;  %v976_v1 = vld [vmem:[%s1362_s0 + $0x8] sm:$0xff]  ;;  %v985_v5 = vld [vmem:[%s1362_s0 + $0x10] sm:$0xff] }
   0x2   :  { %v854_v3 = vpack.i.bf16 %v976_v1, %v971_v0  ;;  %v980_v4 = vshrl.u32 %v25_v2, 7  ;;  %v990_v6 = vld [vmem:[%s1362_s0 + $0x18] sm:$0xff] }
   0x3   :  { %v864_v7 = vpack.i.bf16 %v990_v6, %v985_v5 }
   0x4   :  { %855 = vrot.lane.b32.xlu0 %v854_v3, %s927_s29 }
   0x5   :  { %11 = vsyncpa [#allocation3], 0  ;;  %v996_v8 = vadd.s32 8, %v980_v4  ;;  %v35_v9 = vand.u32 65535, %v980_v4  ;;  %v36_v10 = vshrl.u32 %v980_v4, 16  ;;  %v256_v11 = vrot.slane %v976_v1, 1  ;;  %865 = vrot.lane.b32.xlu1 %v864_v7, %s927_s29 }
   0x6   :  { %v255_v12 = vrot.slane %v971_v0, 1  ;;  %v257_v18 = vrot.slane %v985_v5, 1  ;;  %v1007_v19 = vadd.s32 16, %v980_v4  ;;  %v1010_v23 = vadd.s32 24, %v980_v4  ;;  %s929_s11 = smov 64   ;;  %s931_s10 = smov 128  }
   0x7   :  { %v38_v13 = vmul.u32 43691, %v35_v9  ;;  %v39_v14 = vmul.u32 43690, %v35_v9  ;;  %v40_v15 = vmul.u32 43691, %v36_v10  ;;  %v64_v16 = vand.u32 65535, %v996_v8  ;;  %s932_s12 = smov 8  }
   0x8   :  { %v65_v17 = vshrl.u32 %v996_v8, 16  ;;  %v41_v20 = vmul.u32 43690, %v36_v10  ;;  %v93_v29 = vand.u32 65535, %v1007_v19  ;;  %v94_v30 = vshrl.u32 %v1007_v19, 16 }
   0x9   :  { %v42_v21 = vshll.u32 %v39_v14, 16  ;;  %v44_v22 = vshll.u32 %v40_v15, 16  ;;  %v43_v24 = vshrl.u32 %v39_v14, 16  ;;  %v67_v25 = vmul.u32 43691, %v64_v16 }
   0xa   :  { %v68_v26 = vmul.u32 43690, %v64_v16  ;;  %v69_v27 = vmul.u32 43691, %v65_v17  ;;  %v928_v31 = vmov 0   ;;  %v70_v33 = vmul.u32 43690, %v65_v17 }
   0xb   :  { %vm46_vm0 = vc.u32 %v38_v13, %v42_v21  ;;  %v48_v28 = vadd.s32 %v42_v21, %v38_v13  ;;  %v45_v36 = vshrl.u32 %v40_v15, 16  ;;  %v96_v38 = vmul.u32 43691, %v93_v29 }
   0xc   :  { %v47_v32 = vsel %vm46_vm0, 1, %v928_v31  ;;  %v71_v34 = vshll.u32 %v68_v26, 16  ;;  %v73_v35 = vshll.u32 %v69_v27, 16  ;;  %v97_v41 = vmul.u32 43690, %v93_v29 }
   0xd   :  { %v49_v37 = vadd.s32 %v47_v32, %v41_v20  ;;  %vm50_vm1 = vc.u32 %v48_v28, %v44_v22  ;;  %v72_v43 = vshrl.u32 %v68_v26, 16  ;;  %v98_v45 = vmul.u32 43691, %v94_v30  ;;  %v1033_v26 = vld [vmem:[%s1362_s0 + $0x28] sm:$0xff] }
   0xe   :  { %v51_v39 = vsel %vm50_vm1, 1, %v928_v31  ;;  %vm75_vm2 = vc.u32 %v67_v25, %v71_v34  ;;  %v77_v40 = vadd.s32 %v71_v34, %v67_v25  ;;  %v99_v47 = vmul.u32 43690, %v94_v30  ;;  %v1045_v34 = vld [vmem:[%s1362_s0 + $0x20] sm:$0xff]  ;;  %s732_s0 = sshll.u32 %s1368_s6, 4  ;;  %s733_s0 = int_to_ptr.hbm [resolvable:$true] %s732_s0 }
   0xf   :  { %v53_v42 = vadd.s32 %v51_v39, %v49_v37  ;;  %v76_v44 = vsel %vm75_vm2, 1, %v928_v31  ;;  %v100_v48 = vshll.u32 %v97_v41, 16  ;;  %v74_v50 = vshrl.u32 %v69_v27, 16 }
  0x10   :  { %v78_v46 = vadd.s32 %v76_v44, %v70_v33  ;;  %vm79_vm3 = vc.u32 %v77_v40, %v73_v35  ;;  %v102_v52 = vshll.u32 %v98_v45, 16  ;;  %v122_v55 = vand.u32 65535, %v1010_v23 }
  0x11   :  { %v54_v49 = vadd.s32 %v53_v42, %v43_v24  ;;  %v80_v51 = vsel %vm79_vm3, 1, %v928_v31  ;;  %vm104_vm4 = vc.u32 %v96_v38, %v100_v48  ;;  %v106_v54 = vadd.s32 %v100_v48, %v96_v38 }
  0x12   :  { %v82_v53 = vadd.s32 %v80_v51, %v78_v46  ;;  %v101_v57 = vshrl.u32 %v97_v41, 16  ;;  %v105_v58 = vsel %vm104_vm4, 1, %v928_v31  ;;  %v123_v59 = vshrl.u32 %v1010_v23, 16 }
  0x13   :  { %v55_v56 = vadd.s32 %v54_v49, %v45_v36  ;;  %v107_v61 = vadd.s32 %v105_v58, %v99_v47  ;;  %vm108_vm5 = vc.u32 %v106_v54, %v102_v52  ;;  %v125_v62 = vmul.u32 43691, %v122_v55 }
  0x14   :  { %v83_v60 = vadd.s32 %v82_v53, %v72_v43  ;;  %v109_v2 = vsel %vm108_vm5, 1, %v928_v31  ;;  %v126_v3 = vmul.u32 43690, %v122_v55  ;;  %v127_v7 = vmul.u32 43691, %v123_v59 }
  0x15   :  { %v56_v63 = vshrl.u32 %v55_v56, 4  ;;  %vm261_vm6 = vcmp.lt.s32.totalorder %v980_v4, 7  ;;  %v103_v10 = vshrl.u32 %v98_v45, 16  ;;  %v111_v13 = vadd.s32 %v109_v2, %v107_v61 }
  0x16   :  { %v84_v9 = vadd.s32 %v83_v60, %v74_v50  ;;  %v128_v15 = vmul.u32 43690, %v123_v59  ;;  %v129_v16 = vshll.u32 %v126_v3, 16  ;;  %v131_v21 = vshll.u32 %v127_v7, 16 }
  0x17   :  { %v57_v14 = vmul.u32 24, %v56_v63  ;;  %v112_v20 = vadd.s32 %v111_v13, %v101_v57  ;;  %v265_v24 = vsel %vm261_vm6, %v256_v11, %v257_v18  ;;  %v266_v28 = vsel %vm261_vm6, %v255_v12, %v256_v11  ;;  %v826_v13 = vld [vmem:[%s1364_s2 + $0x20] sm:$0xff] }
  0x18   :  { %v85_v17 = vshrl.u32 %v84_v9, 4  ;;  %vm133_vm7 = vc.u32 %v125_v62, %v129_v16  ;;  %v135_v25 = vadd.s32 %v129_v16, %v125_v62  ;;  %v874_v11 = vpack.i.bf16 %v1033_v26, %v1045_v34  ;;  %v827_v62 = vld [vmem:[%s1364_s2 + $0x28] sm:$0xff] }
  0x19   :  { %v58_v22 = vsub.s32 %v980_v4, %v57_v14  ;;  %v113_v29 = vadd.s32 %v112_v20, %v103_v10  ;;  %v134_v30 = vsel %vm133_vm7, 1, %v928_v31  ;;  %v130_v38 = vshrl.u32 %v126_v3, 16  ;;  %445 = vmatpush.bf16.msra.mxu0 %v827_v62 }
  0x1a   :  { %v86_v27 = vmul.u32 24, %v85_v17  ;;  %v136_v33 = vadd.s32 %v134_v30, %v128_v15  ;;  %vm137_vm11 = vc.u32 %v135_v25, %v131_v21  ;;  %v1054_v40 = vadd.s32 32, %v980_v4  ;;  %875 = vrot.lane.b32.xlu2 %v874_v11, %s927_s29 }
  0x1b   :  { %vm206_vm8 = vcmp.ne.s32.totalorder %v58_v22, 0  ;;  %vm212_vm9 = vcmp.lt.s32.totalorder %v58_v22, 0  ;;  %v224_v32 = vadd.s32 24, %v58_v22  ;;  %v114_v36 = vshrl.u32 %v113_v29, 4 }
  0x1c   :  { %v87_v35 = vsub.s32 %v996_v8, %v86_v27  ;;  %vm218_vm10 = vmand %vm212_vm9, %vm206_vm8  ;;  %v138_v39 = vsel %vm137_vm11, 1, %v928_v31  ;;  %v132_v42 = vshrl.u32 %v127_v7, 16  ;;  %v151_v44 = vand.u32 65535, %v1054_v40 }
  0x1d   :  { %v1050_v37 = vsel %vm218_vm10, %v224_v32, %v58_v22  ;;  %v115_v8 = vmul.u32 24, %v114_v36  ;;  %v140_v43 = vadd.s32 %v138_v39, %v136_v33  ;;  %v1064_v47 = vadd.s32 40, %v980_v4  ;;  %446 = vmatpush.bf16.msra.mxu0 %v826_v13  ;;  %v825_v32 = vld [vmem:[%s1364_s2 + $0x18] sm:$0xff]  ;;  %v824_v13 = vld [vmem:[%s1364_s2 + $0x10] sm:$0xff] }
  0x1e   :  { %vm207_vm12 = vcmp.ne.s32.totalorder %v87_v35, 0  ;;  %vm213_vm13 = vcmp.lt.s32.totalorder %v87_v35, 0  ;;  %v225_v41 = vadd.s32 24, %v87_v35  ;;  %vm292_vm15 = vcmp.eq.s32.totalorder %v1050_v37, 23 }
  0x1f   :  { %vm219_vm14 = vmand %vm213_vm13, %vm207_vm12  ;;  %v310_v46 = vsel %vm292_vm15, 0.0, %v266_v28  ;;  %v152_v48 = vshrl.u32 %v1054_v40, 16  ;;  %v258_v49 = vrot.slane %v990_v6, 1  ;;  %v116_v50 = vsub.s32 %v1007_v19, %v115_v8 }
  0x20   :  { %v1059_v45 = vsel %vm219_vm14, %v225_v41, %v87_v35  ;;  %v141_v51 = vadd.s32 %v140_v43, %v130_v38  ;;  %v154_v53 = vmul.u32 43691, %v151_v44  ;;  %v155_v54 = vmul.u32 43690, %v151_v44 }
  0x21   :  { %vm293_vm0 = vcmp.eq.s32.totalorder %v1059_v45, 23  ;;  %v156_v55 = vmul.u32 43691, %v152_v48  ;;  %vm208_vm1 = vcmp.ne.s32.totalorder %v116_v50, 0  ;;  %vm214_vm2 = vcmp.lt.s32.totalorder %v116_v50, 0  ;;  %447 = vmatpush.bf16.msra.mxu0 %v825_v32 }
  0x22   :  { %v311_v52 = vsel %vm293_vm0, 0.0, %v265_v24  ;;  %v142_v57 = vadd.s32 %v141_v51, %v132_v42  ;;  %vm1072_vm3 = vmand %vm214_vm2, %vm208_vm1  ;;  %v226_v59 = vadd.s32 24, %v116_v50  ;;  %v157_v60 = vmul.u32 43690, %v152_v48 }
  0x23   :  { %v859_v56 = vpack.i.bf16 %v311_v52, %v310_v46  ;;  %v158_v61 = vshll.u32 %v155_v54, 16  ;;  %v180_v19 = vand.u32 65535, %v1064_v47  ;;  %v160_v2 = vshll.u32 %v156_v55, 16 }
  0x24   :  { %v143_v63 = vshrl.u32 %v142_v57, 4  ;;  %v181_v3 = vshrl.u32 %v1064_v47, 16  ;;  %v259_v7 = vrot.slane %v1045_v34, 1  ;;  %v264_v9 = vsel %vm261_vm6, %v257_v18, %v258_v49 }
  0x25   :  { %860 = vrot.lane.b32.xlu0 %v859_v56, %s929_s11  ;;  %vm162_vm4 = vc.u32 %v154_v53, %v158_v61  ;;  %v164_v10 = vadd.s32 %v158_v61, %v154_v53  ;;  %v1092_v15 = vsel %vm1072_vm3, %v226_v59, %v116_v50  ;;  %v159_v16 = vshrl.u32 %v155_v54, 16  ;;  %448 = vmatpush.bf16.msra.mxu0 %v824_v13 }
  0x26   :  { %v144_v14 = vmul.u32 24, %v143_v63  ;;  %v163_v17 = vsel %vm162_vm4, 1, %v928_v31  ;;  %v183_v21 = vmul.u32 43691, %v180_v19  ;;  %v184_v22 = vmul.u32 43690, %v180_v19 }
  0x27   :  { %v165_v20 = vadd.s32 %v163_v17, %v157_v60  ;;  %vm166_vm5 = vc.u32 %v164_v10, %v160_v2  ;;  %v161_v24 = vshrl.u32 %v156_v55, 16  ;;  %v185_v27 = vmul.u32 43691, %v181_v3 }
  0x28   :  { %v145_v18 = vsub.s32 %v1010_v23, %v144_v14  ;;  %v167_v25 = vsel %vm166_vm5, 1, %v928_v31  ;;  %vm294_vm7 = vcmp.eq.s32.totalorder %v1092_v15, 23  ;;  %v186_v29 = vmul.u32 43690, %v181_v3 }
  0x29   :  { %v169_v28 = vadd.s32 %v167_v25, %v165_v20  ;;  %v187_v30 = vshll.u32 %v184_v22, 16  ;;  %v189_v35 = vshll.u32 %v185_v27, 16  ;;  %v263_v23 = vsel %vm261_vm6, %v258_v49, %v259_v7 }
  0x2a   :  { %vm209_vm8 = vcmp.ne.s32.totalorder %v145_v18, 0  ;;  %vm215_vm9 = vcmp.lt.s32.totalorder %v145_v18, 0  ;;  %v227_v33 = vadd.s32 24, %v145_v18  ;;  %v312_v39 = vsel %vm294_vm7, 0.0, %v264_v9 }
  0x2b   :  { %vm221_vm10 = vmand %vm215_vm9, %vm209_vm8  ;;  %v170_v36 = vadd.s32 %v169_v28, %v159_v16  ;;  %vm191_vm11 = vc.u32 %v183_v21, %v187_v30  ;;  %v193_v11 = vadd.s32 %v187_v30, %v183_v21  ;;  %v188_v44 = vshrl.u32 %v184_v22, 16 }
  0x2c   :  { %v1105_v38 = vsel %vm221_vm10, %v227_v33, %v145_v18  ;;  %v192_v41 = vsel %vm191_vm11, 1, %v928_v31  ;;  %v190_v50 = vshrl.u32 %v185_v27, 16  ;;  %v260_v58 = vrot.slane %v1033_v26, 1 }
  0x2d   :  { %vm295_vm12 = vcmp.eq.s32.totalorder %v1105_v38, 23  ;;  %v171_v42 = vadd.s32 %v170_v36, %v161_v24  ;;  %v194_v8 = vadd.s32 %v192_v41, %v186_v29  ;;  %vm195_vm13 = vc.u32 %v193_v11, %v189_v35 }
  0x2e   :  { %v313_v43 = vsel %vm295_vm12, 0.0, %v263_v23  ;;  %v196_v49 = vsel %vm195_vm13, 1, %v928_v31  ;;  %v262_v61 = vsel %vm261_vm6, %v259_v7, %v260_v58  ;;  %v267_v19 = vsel %vm261_vm6, %v260_v58, %v255_v12 }
  0x2f   :  { %v869_v46 = vpack.i.bf16 %v313_v43, %v312_v39  ;;  %v172_v48 = vshrl.u32 %v171_v42, 4  ;;  %v198_v51 = vadd.s32 %v196_v49, %v194_v8  ;;  %v243_v3 = vrot.slane %v976_v1, 7  ;;  %v823_v1 = vld [vmem:[%s1364_s2 + $0x8] sm:$0xff] }
  0x30   :  { %v242_v7 = vrot.slane %v971_v0, 7  ;;  %v247_v9 = vrot.slane %v1033_v26, 7  ;;  %vm248_vm10 = vcmp.lt.s32.totalorder %v980_v4, 1  ;;  %449 = vmatpush.bf16.msra.mxu0 %v823_v1  ;;  %v822_v0 = vld [vmem:[%s1364_s2] sm:$0xff]  ;;  %vm268_vm11 = vcmp.eq.s32.totalorder %v1050_v37, 0 }
  0x31   :  { %870 = vrot.lane.b32.xlu1 %v869_v46, %s929_s11  ;;  %v173_v52 = vmul.u32 24, %v172_v48  ;;  %v199_v53 = vadd.s32 %v198_v51, %v188_v44  ;;  %vm1369_vm13 = vcmp.eq.s32.totalorder %v1059_v45, 0  ;;  %v246_v16 = vrot.slane %v1045_v34, 7  ;;  %v900_v4 = vld [vmem:[%s1367_s5] ss:$0 sm:$0xff]  ;;  %s930_s5 = smov [#allocation2]  }
  0x32   :  { %v253_v12 = vsel %vm248_vm10, %v242_v7, %v243_v3  ;;  %v254_v10 = vsel %vm248_vm10, %v247_v9, %v242_v7  ;;  %v245_v21 = vrot.slane %v990_v6, 7  ;;  %v244_v30 = vrot.slane %v985_v5, 7  ;;  %v836_v7 = vld [vmem:[%s1366_s4 + $0x40] sm:$0xff]  ;;  %s730_s8 = sshll.u32 %s930_s5, 4  ;;  %s731_s8 = int_to_ptr.vmem [resolvable:$true] %s730_s8 }
  0x33   :  { %v174_v54 = vsub.s32 %v1054_v40, %v173_v52  ;;  %v200_v55 = vadd.s32 %v199_v53, %v190_v50  ;;  %v286_v22 = vsel %vm268_vm11, 0.0, %v254_v10  ;;  %v287_v18 = vsel %vm1369_vm13, 0.0, %v253_v12 }
  0x34   :  { %450 = vmatpush.bf16.msra.mxu0 %v822_v0  ;;  %v249_v34 = vsel %vm248_vm10, %v246_v16, %v247_v9  ;;  %v250_v6 = vsel %vm248_vm10, %v245_v21, %v246_v16  ;;  %vm270_vm13 = vcmp.eq.s32.totalorder %v1092_v15, 0  ;;  %v251_v5 = vsel %vm248_vm10, %v244_v30, %v245_v21  ;;  %v480_v16 = vld [vmem:[%s1363_s1 + $0x8] sm:$0xff] }
  0x35   :  { %vm210_vm14 = vcmp.ne.s32.totalorder %v174_v54, 0  ;;  %vm216_vm1 = vcmp.lt.s32.totalorder %v174_v54, 0  ;;  %v228_v56 = vadd.s32 24, %v174_v54  ;;  %v201_v57 = vshrl.u32 %v200_v55, 4 }
  0x36   :  { %vm222_vm2 = vmand %vm216_vm1, %vm210_vm14  ;;  %vm364_vm14 = vcmask 261120   ;;  %v252_v42 = vsel %vm248_vm10, %v243_v3, %v244_v30  ;;  %v1210_v3 = vld [vmem:[%s1365_s3] ss:$0 sm:$0xff] }
  0x37   :  { %v202_v59 = vmul.u32 24, %v201_v57  ;;  %v1117_v60 = vsel %vm222_vm2, %v228_v56, %v174_v54  ;;  %v288_v51 = vsel %vm270_vm13, 0.0, %v252_v42 }
  0x38   :  { %vm296_vm3 = vcmp.eq.s32.totalorder %v1117_v60, 23  ;;  %vm272_vm2 = vcmp.eq.s32.totalorder %v1117_v60, 0 }
  0x39   :  { %v203_v31 = vsub.s32 %v1064_v47, %v202_v59  ;;  %v314_v47 = vsel %vm296_vm3, 0.0, %v262_v61  ;;  %v290_v39 = vsel %vm272_vm2, 0.0, %v250_v6 }
  0x3b   :  { %vm211_vm4 = vcmp.ne.s32.totalorder %v203_v31, 0  ;;  %vm217_vm5 = vcmp.lt.s32.totalorder %v203_v31, 0  ;;  %v229_v40 = vadd.s32 24, %v203_v31 }
  0x3c   :  { %vm223_vm8 = vmand %vm217_vm5, %vm211_vm4  ;;  %vm371_vm4 = vcmask 523264   ;;  %vm433_vm5 = vcmask 785408  }
  0x3d   :  { %v1129_v62 = vsel %vm223_vm8, %v229_v40, %v203_v31  ;;  %vm271_vm8 = vcmp.eq.s32.totalorder %v1105_v38, 0 }
  0x3e   :  { %vm297_vm9 = vcmp.eq.s32.totalorder %v1129_v62, 23  ;;  %vm273_vm1 = vcmp.eq.s32.totalorder %v1129_v62, 0  ;;  %v289_v52 = vsel %vm271_vm8, 0.0, %v251_v5 }
  0x3f   :  { %v315_v63 = vsel %vm297_vm9, 0.0, %v267_v19  ;;  %v291_v41 = vsel %vm273_vm1, 0.0, %v249_v34 }
  0x40   :  { %v879_v2 = vpack.i.bf16 %v315_v63, %v314_v47  ;;  %v839_v47 = vld [vmem:[%s1366_s4 + $0x58] sm:$0xff]  ;;  %v838_v63 = vld [vmem:[%s1366_s4 + $0x50] sm:$0xff] }
  0x41   :  { %700 = vmatpush.bf16.msra.mxu2 %v839_v47 }
  0x42   :  { %880 = vrot.lane.b32.xlu2 %v879_v2, %s929_s11  ;;  %v837_v2 = vld [vmem:[%s1366_s4 + $0x48] sm:$0xff] }
  0x45   :  { %701 = vmatpush.bf16.msra.mxu2 %v838_v63 }
  0x49   :  { %702 = vmatpush.bf16.msra.mxu2 %v837_v2 }
  0x4d   :  { %703 = vmatpush.bf16.msra.mxu2 %v836_v7 }
  0x74   :  { %v876_v14 = vpop.permute.xlu2 %875 }
  0x75   :  { %v878_v23 = vunpack.i.h.bf16 %v876_v14  ;;  %v877_v36 = vunpack.i.l.bf16 %v876_v14 }
  0x76   :  { %v856_v26 = vpop.permute.xlu0 %855 }
  0x77   :  { %v858_v17 = vunpack.i.h.bf16 %v856_v26  ;;  %v857_v20 = vunpack.i.l.bf16 %v856_v26  ;;  %v866_v32 = vpop.permute.xlu1 %865  ;;  %v369_v8 = vsel %vm364_vm14, %v290_v39, %v877_v36  ;;  %v370_v43 = vsel %vm364_vm14, %v291_v41, %v878_v23  ;;  %v479_v26 = vld [vmem:[%s1363_s1] sm:$0xff] }
  0x78   :  { %v868_v49 = vunpack.i.h.bf16 %v866_v32  ;;  %v867_v50 = vunpack.i.l.bf16 %v866_v32 }
  0x79   :  { %v365_v28 = vsel %vm364_vm14, %v286_v22, %v857_v20  ;;  %v366_v29 = vsel %vm364_vm14, %v287_v18, %v858_v17 }
  0x7a   :  { %v367_v56 = vsel %vm364_vm14, %v288_v51, %v867_v50  ;;  %v368_v57 = vsel %vm364_vm14, %v289_v52, %v868_v49  ;;  %v835_v50 = vld [vmem:[%s1366_s4 + $0x38] sm:$0xff] }
  0x7b   :  { %672 = vmatpush.bf16.msra.mxu1 %v835_v50  ;;  %840 = vmatpush.bf16.msra.mxu3 %v835_v50 }
  0x97   :  { %v861_v24 = vpop.permute.xlu0 %860 }
  0x98   :  { %v863_v25 = vunpack.i.h.bf16 %v861_v24  ;;  %v862_v27 = vunpack.i.l.bf16 %v861_v24 }
  0x9a   :  { %v372_v33 = vsel %vm371_vm4, %v365_v28, %v862_v27  ;;  %v373_v35 = vsel %vm371_vm4, %v366_v29, %v863_v25  ;;  %v481_v28 = vld [vmem:[%s1363_s1 + $0x10] sm:$0xff] }
  0x9b   :  { %v378_v11 = vpack.c.bf16 %v373_v35, %v372_v33 }
  0x9c   :  { %v881_v44 = vpop.permute.xlu2 %880 }
  0x9d   :  { %768 = vmatmul.msk.bf16.vlgmr.msra.gmra.mxu0 %vm433_vm5, %v378_v11  ;;  %v883_v46 = vunpack.i.h.bf16 %v881_v44  ;;  %v882_v48 = vunpack.i.l.bf16 %v881_v44 }
  0x9f   :  { %v376_v53 = vsel %vm371_vm4, %v369_v8, %v882_v48  ;;  %v377_v54 = vsel %vm371_vm4, %v370_v43, %v883_v46  ;;  %v482_v8 = vld [vmem:[%s1363_s1 + $0x18] sm:$0xff] }
  0xa0   :  { %v380_v55 = vpack.c.bf16 %v377_v54, %v376_v53 }
  0xa3   :  { %v871_v58 = vpop.permute.xlu1 %870 }
  0xa4   :  { %v873_v59 = vunpack.i.h.bf16 %v871_v58  ;;  %v872_v31 = vunpack.i.l.bf16 %v871_v58  ;;  %v483_v58 = vld [vmem:[%s1363_s1 + $0x20] sm:$0xff] }
  0xa6   :  { %v374_v61 = vsel %vm371_vm4, %v367_v56, %v872_v31  ;;  %v375_v40 = vsel %vm371_vm4, %v368_v57, %v873_v59 }
  0xa7   :  { %v379_v19 = vpack.c.bf16 %v375_v40, %v374_v61  ;;  %v833_v61 = vld [vmem:[%s1366_s4 + $0x28] sm:$0xff] }
  0xad   :  { %769 = vmatmul.msk.bf16.gmra.mxu0 %vm433_vm5, %v379_v19 }
  0xbd   :  { %770 = vmatmul.msk.bf16.gmra.mxu0 %vm433_vm5, %v380_v55  ;;  %v834_v55 = vld [vmem:[%s1366_s4 + $0x30] sm:$0xff] }
  0xbe   :  { %673 = vmatpush.bf16.msra.mxu1 %v834_v55  ;;  %841 = vmatpush.bf16.msra.mxu3 %v834_v55 }
  0xc2   :  { %674 = vmatpush.bf16.msra.mxu1 %v833_v61  ;;  %842 = vmatpush.bf16.msra.mxu3 %v833_v61 }
 0x11a   :  { %v452_v9 = vpop.f32.mrf.mxu0 }
 0x11b   :  { %v453_v12 = vadd.f32 %v1210_v3, %v452_v9  ;;  %v832_v9 = vld [vmem:[%s1366_s4 + $0x20] sm:$0xff] }
 0x11c   :  { %675 = vmatpush.bf16.msra.mxu1 %v832_v9  ;;  %843 = vmatpush.bf16.msra.mxu3 %v832_v9 }
 0x11d   :  { %v467_v10 = vmul.f32 0.1, %v453_v12 }
 0x11f   :  { %v473_v1 = vmax.f32 %v453_v12, %v467_v10 }
 0x121   :  { %v1223_v17 = vadd.f32 %v479_v26, %v473_v1 }
 0x122   :  { %v454_v13 = vpop.f32.mrf.mxu0 }
 0x123   :  { %v455_v0 = vadd.f32 %v1210_v3, %v454_v13  ;;  %v491_v18 = vrot.slane %v1223_v17, 7  ;;  %v503_v32 = vrot.slane %v1223_v17, 1 }
 0x125   :  { %v468_v14 = vmul.f32 0.1, %v455_v0 }
 0x127   :  { %v474_v20 = vmax.f32 %v455_v0, %v468_v14 }
 0x129   :  { %v486_v21 = vadd.f32 %v480_v16, %v474_v20  ;;  %v831_v16 = vld [vmem:[%s1366_s4 + $0x18] sm:$0xff] }
 0x12a   :  { %v457_v22 = vpop.f32.mrf.mxu0  ;;  %676 = vmatpush.bf16.msra.mxu1 %v831_v16  ;;  %844 = vmatpush.bf16.msra.mxu3 %v831_v16 }
 0x12b   :  { %v492_v24 = vrot.slane %v486_v21, 7  ;;  %v458_v25 = vadd.f32 %v1210_v3, %v457_v22  ;;  %v894_v27 = vpack.i.bf16 %v486_v21, %v1223_v17  ;;  %v504_v29 = vrot.slane %v486_v21, 1  ;;  %v830_v22 = vld [vmem:[%s1366_s4 + $0x10] sm:$0xff] }
 0x12d   :  { %v469_v34 = vmul.f32 0.1, %v458_v25  ;;  %895 = vrot.lane.b32.xlu2 %v894_v27, %s929_s11  ;;  %v1233_v6 = vsel %vm248_vm10, %v491_v18, %v492_v24  ;;  %v513_v39 = vsel %vm261_vm6, %v503_v32, %v504_v29 }
 0x12e   :  { %v521_v43 = vsel %vm292_vm15, 0.0, %v513_v39  ;;  %677 = vmatpush.bf16.msra.mxu1 %v830_v22  ;;  %845 = vmatpush.bf16.msra.mxu3 %v830_v22 }
 0x12f   :  { %v475_v30 = vmax.f32 %v458_v25, %v469_v34  ;;  %v829_v25 = vld [vmem:[%s1366_s4 + $0x8] sm:$0xff] }
 0x131   :  { %v487_v33 = vadd.f32 %v481_v28, %v475_v30 }
 0x132   :  { %v459_v35 = vpop.f32.mrf.mxu0  ;;  %678 = vmatpush.bf16.msra.mxu1 %v829_v25  ;;  %846 = vmatpush.bf16.msra.mxu3 %v829_v25 }
 0x133   :  { %v493_v23 = vrot.slane %v487_v33, 7  ;;  %v505_v36 = vrot.slane %v487_v33, 1  ;;  %v460_v11 = vadd.f32 %v1210_v3, %v459_v35 }
 0x135   :  { %v470_v41 = vmul.f32 0.1, %v460_v11  ;;  %v512_v5 = vsel %vm261_vm6, %v504_v29, %v505_v36  ;;  %v1248_v42 = vsel %vm248_vm10, %v492_v24, %v493_v23 }
 0x136   :  { %v522_v44 = vsel %vm293_vm0, 0.0, %v512_v5 }
 0x137   :  { %v476_v46 = vmax.f32 %v460_v11, %v470_v41  ;;  %v558_v48 = vpack.c.bf16 %v522_v44, %v521_v43 }
 0x139   :  { %v488_v49 = vadd.f32 %v482_v8, %v476_v46  ;;  %819 = vmatmul.msk.bf16.vlgmr.msra.gmra.mxu2 %vm371_vm4, %v558_v48 }
 0x13a   :  { %v462_v51 = vpop.f32.mrf.mxu0 }
 0x13b   :  { %v494_v52 = vrot.slane %v488_v49, 7  ;;  %v463_v53 = vadd.f32 %v1210_v3, %v462_v51  ;;  %v884_v54 = vpack.i.bf16 %v488_v49, %v487_v33  ;;  %v506_v59 = vrot.slane %v488_v49, 1  ;;  %v828_v33 = vld [vmem:[%s1366_s4] sm:$0xff] }
 0x13c   :  { %679 = vmatpush.bf16.msra.mxu1 %v828_v33  ;;  %847 = vmatpush.bf16.msra.mxu3 %v828_v33 }
 0x13d   :  { %v471_v56 = vmul.f32 0.1, %v463_v53  ;;  %885 = vrot.lane.b32.xlu0 %v884_v54, %s929_s11  ;;  %v1268_v57 = vsel %vm248_vm10, %v493_v23, %v494_v52  ;;  %v511_v7 = vsel %vm261_vm6, %v505_v36, %v506_v59 }
 0x13e   :  { %v523_v1 = vsel %vm294_vm7, 0.0, %v511_v7  ;;  %v518_v37 = vsel %vm271_vm8, 0.0, %v1268_v57 }
 0x13f   :  { %v477_v31 = vmax.f32 %v463_v53, %v471_v56 }
 0x141   :  { %v1276_v40 = vadd.f32 %v483_v58, %v477_v31 }
 0x142   :  { %v464_v19 = vpop.f32.mrf.mxu0 }
 0x143   :  { %v495_v47 = vrot.slane %v1276_v40, 7  ;;  %v507_v63 = vrot.slane %v1276_v40, 1  ;;  %v465_v2 = vadd.f32 %v1210_v3, %v464_v19  ;;  %v484_v3 = vld [vmem:[%s1363_s1 + $0x28] sm:$0xff] }
 0x145   :  { %v472_v12 = vmul.f32 0.1, %v465_v2  ;;  %v510_v10 = vsel %vm261_vm6, %v506_v59, %v507_v63  ;;  %v498_v13 = vsel %vm248_vm10, %v494_v52, %v495_v47 }
 0x146   :  { %v524_v0 = vsel %vm295_vm12, 0.0, %v510_v10  ;;  %v519_v15 = vsel %vm272_vm2, 0.0, %v498_v13 }
 0x147   :  { %v478_v26 = vmax.f32 %v465_v2, %v472_v12  ;;  %v560_v14 = vpack.c.bf16 %v524_v0, %v523_v1 }
 0x149   :  { %v490_v20 = vadd.f32 %v484_v3, %v478_v26  ;;  %820 = vmatmul.msk.bf16.gmra.mxu2 %vm371_vm4, %v560_v14 }
 0x14b   :  { %v889_v21 = vpack.i.bf16 %v490_v20, %v1276_v40  ;;  %v508_v24 = vrot.slane %v490_v20, 1  ;;  %v496_v35 = vrot.slane %v490_v20, 7 }
 0x14d   :  { %890 = vrot.lane.b32.xlu1 %v889_v21, %s929_s11  ;;  %v509_v27 = vsel %vm261_vm6, %v507_v63, %v508_v24  ;;  %v514_v34 = vsel %vm261_vm6, %v508_v24, %v503_v32  ;;  %v502_v32 = vsel %vm248_vm10, %v496_v35, %v491_v18  ;;  %vm1372_vm6 = vcmp.eq.s32.totalorder %v1059_v45, 0 }
 0x14e   :  { %v525_v28 = vsel %vm296_vm3, 0.0, %v509_v27  ;;  %v526_v29 = vsel %vm297_vm9, 0.0, %v514_v34  ;;  %v515_v39 = vsel %vm268_vm11, 0.0, %v502_v32  ;;  %v516_v41 = vsel %vm1372_vm6, 0.0, %v1233_v6 }
 0x14f   :  { %v562_v30 = vpack.c.bf16 %v526_v29, %v525_v28  ;;  %v517_v18 = vsel %vm270_vm13, 0.0, %v1248_v42  ;;  %v497_v49 = vsel %vm248_vm10, %v495_v47, %v496_v35 }
 0x150   :  { %v520_v42 = vsel %vm273_vm1, 0.0, %v497_v49 }
 0x159   :  { %821 = vmatmul.msk.bf16.gmra.mxu2 %vm371_vm4, %v562_v30 }
 0x187   :  { %v896_v23 = vpop.permute.xlu2 %895 }
 0x188   :  { %v898_v36 = vunpack.i.h.bf16 %v896_v23  ;;  %v897_v11 = vunpack.i.l.bf16 %v896_v23 }
 0x18a   :  { %v551_v5 = vsel %vm371_vm4, %v515_v39, %v897_v11  ;;  %v552_v8 = vsel %vm371_vm4, %v516_v41, %v898_v36 }
 0x18b   :  { %v557_v43 = vpack.c.bf16 %v552_v8, %v551_v5 }
 0x18d   :  { %680 = vmatmul.bf16.vlgmr.msra.gmra.mxu1 %v557_v43 }
 0x1af   :  { %v886_v17 = vpop.permute.xlu0 %885 }
 0x1b0   :  { %v888_v44 = vunpack.i.h.bf16 %v886_v17  ;;  %v887_v46 = vunpack.i.l.bf16 %v886_v17 }
 0x1b2   :  { %v553_v45 = vsel %vm371_vm4, %v517_v18, %v887_v46  ;;  %v554_v6 = vsel %vm371_vm4, %v518_v37, %v888_v44 }
 0x1b3   :  { %v559_v48 = vpack.c.bf16 %v554_v6, %v553_v45 }
 0x1b5   :  { %685 = vmatmul.bf16.vlgmr.msra.gmra.mxu3 %v559_v48 }
 0x1bc   :  { %v705_v55 = vpop.f32.mrf.mxu2 }
 0x1bf   :  { %v891_v50 = vpop.permute.xlu1 %890 }
 0x1c0   :  { %v893_v51 = vunpack.i.h.bf16 %v891_v50  ;;  %v892_v52 = vunpack.i.l.bf16 %v891_v50 }
 0x1c2   :  { %v555_v38 = vsel %vm371_vm4, %v519_v15, %v892_v52  ;;  %v556_v53 = vsel %vm371_vm4, %v520_v42, %v893_v51 }
 0x1c3   :  { %v561_v54 = vpack.c.bf16 %v556_v53, %v555_v38 }
 0x1c4   :  { %v707_v62 = vpop.f32.mrf.mxu2 }
 0x1c5   :  { %690 = vmatmul.bf16.gmra.mxu3 %v561_v54 }
 0x1cc   :  { %v710_v61 = vpop.f32.mrf.mxu2 }
 0x1d4   :  { %v712_v63 = vpop.f32.mrf.mxu2 }
 0x1dc   :  { %v715_v12 = vpop.f32.mrf.mxu2 }
 0x1e4   :  { %v717_v26 = vpop.f32.mrf.mxu2 }
 0x20a   :  { %v681_v56 = vpop.f32.mrf.mxu1 }
 0x20b   :  { %v682_v57 = vadd.f32 %v900_v4, %v681_v56 }
 0x20d   :  { %v706_v58 = vadd.f32 %v705_v55, %v682_v57 }
 0x20f   :  { %720 = vst.msk [vmem:[#allocation2] sm:$0xff] %vm364_vm14, %v706_v58 }
 0x212   :  { %v683_v60 = vpop.f32.mrf.mxu1 }
 0x213   :  { %v684_v59 = vadd.f32 %v900_v4, %v683_v60 }
 0x215   :  { %v708_v31 = vadd.f32 %v707_v62, %v684_v59 }
 0x217   :  { %721 = vst.msk [vmem:[#allocation2 + $0x8] sm:$0xff] %vm364_vm14, %v708_v31 }
 0x238   :  { %v686_v40 = vpop.f32.mrf.mxu3 }
 0x239   :  { %v687_v19 = vadd.f32 %v900_v4, %v686_v40 }
 0x23b   :  { %v711_v47 = vadd.f32 %v710_v61, %v687_v19 }
 0x23d   :  { %722 = vst.msk [vmem:[#allocation2 + $0x10] sm:$0xff] %vm364_vm14, %v711_v47 }
 0x240   :  { %v688_v2 = vpop.f32.mrf.mxu3 }
 0x241   :  { %v689_v7 = vadd.f32 %v900_v4, %v688_v2 }
 0x243   :  { %v713_v9 = vadd.f32 %v712_v63, %v689_v7 }
 0x245   :  { %723 = vst.msk [vmem:[#allocation2 + $0x18] sm:$0xff] %vm364_vm14, %v713_v9 }
 0x248   :  { %v691_v10 = vpop.f32.mrf.mxu3 }
 0x249   :  { %v692_v13 = vadd.f32 %v900_v4, %v691_v10 }
 0x24b   :  { %v716_v3 = vadd.f32 %v715_v12, %v692_v13 }
 0x24d   :  { %724 = vst.msk [vmem:[#allocation2 + $0x20] sm:$0xff] %vm364_vm14, %v716_v3 }
 0x250   :  { %v693_v1 = vpop.f32.mrf.mxu3 }
 0x251   :  { %v694_v0 = vadd.f32 %v900_v4, %v693_v1 }
 0x253   :  { %v718_v14 = vadd.f32 %v717_v26, %v694_v0 }
 0x255   :  { %725 = vst.msk [vmem:[#allocation2 + $0x28] sm:$0xff] %vm364_vm14, %v718_v14 }
 0x256   :  { %738 = dma.vmem_to_hbm [thread:$0]  %s731_s8, 768, %s733_s0, [#allocation3], %s931_s10, %s931_s10, %s932_s12  }
 0x257   :  { %925 = dma.done.wait [#allocation3], 768  }
 0x258   :  { %926 = vsyncadd [#allocation3], 4294966528 }
 0x259   :  { %743 = vsyncpa [#allocation3], 1 }

</bundles_post_ra>
